<compile_context>
chip_gen: v7x
topology: tpu7x:2x2x1
jax: 0.10.0
libtpu: 0.0.40
codegen_flags: <defaults>
</compile_context>

<pallas_src>
import jax
import jax.numpy as jnp
from jax.experimental import pallas as pl
from jax.experimental.pallas import tpu as pltpu


def _pick_hw_tile(hw, c, itemsize, target_lanes=512,
                  max_block_bytes=2 * 1024 * 1024):
    """Largest lane-dense tile (multiple of 128) that divides hw, around
    target_lanes, capped so one (C, T) block stays small enough that the
    double-buffered in+out blocks leave plenty of VMEM headroom (incl. v7x)."""
    if hw % 128 != 0:
        return hw  # fall back to the full dim (legal: equals full array dim)
    budget = max(128, (max_block_bytes // (c * itemsize)) // 128 * 128)
    t = min(hw, max(target_lanes, 128), budget)
    t = (t // 128) * 128
    while hw % t != 0:
        t -= 128
    return t


def _pool_sum_kernel(x_ref, sum_ref):
    # x_ref: (C, T) tile of one batch's (C, HW) slab.
    # sum_ref: (C, 1) f32; same block index across the HW grid axis, so it is
    # VMEM-resident and acts as the accumulator (f32 partial sums, divide-once
    # via the 1/HW weight folding in the wrapper).
    t = pl.program_id(1)

    @pl.when(t == 0)
    def _():
        sum_ref[...] = jnp.zeros_like(sum_ref)

    sum_ref[...] += jnp.sum(x_ref[...].astype(jnp.float32), axis=-1,
                            keepdims=True)


def _scale_kernel(x_ref, gate_ref, o_ref):
    # x_ref: (C, T); gate_ref: (C, 1) f32 gate in sublane layout (no transpose).
    # Multiply in f32, cast only at the store (lane-dense, unmasked vst).
    o_ref[...] = (x_ref[...] * gate_ref[...]).astype(o_ref.dtype)


def channel_attention(x, w1, w2):
    """x: (B, C, H, W) NCHW.  w1: (C_red, C) = nn.Linear(C, C_red).weight.
    w2: (C, C_red) = nn.Linear(C_red, C).weight. Both linears are bias-free."""
    B, C, H, W = x.shape
    HW = H * W
    x_flat = x.reshape(B, C, HW)
    T = _pick_hw_tile(HW, C, x.dtype.itemsize)
    n_hw = HW // T

    # ---- Pass 1: channel sums over spatial (tiled Pallas reduction) ----
    sums = pl.pallas_call(
        _pool_sum_kernel,
        out_shape=jax.ShapeDtypeStruct((B, C, 1), jnp.float32),
        grid=(B, n_hw),
        in_specs=[pl.BlockSpec((None, C, T), lambda b, t: (b, 0, t))],
        out_specs=pl.BlockSpec((None, C, 1), lambda b, t: (b, 0, 0)),
        compiler_params=pltpu.CompilerParams(
            dimension_semantics=("parallel", "arbitrary")),
    )(x_flat)

    # ---- Gate: fc1 (1/HW folded in) -> ReLU -> fc2 -> sigmoid, in XLA ----
    pooled = sums[..., 0]                                       # (B, C) f32 sums
    h = jnp.maximum(pooled @ (w1.astype(jnp.float32).T / HW), 0.0)   # (B, C_red)
    gate = jax.nn.sigmoid(h @ w2.astype(jnp.float32).T)         # (B, C) f32
    gate = gate[..., None]                                      # (B, C, 1)

    # ---- Pass 2: broadcast-scale (fully parallel over B and HW tiles) ----
    out_flat = pl.pallas_call(
        _scale_kernel,
        out_shape=jax.ShapeDtypeStruct((B, C, HW), x.dtype),
        grid=(B, n_hw),
        in_specs=[
            pl.BlockSpec((None, C, T), lambda b, t: (b, 0, t)),
            pl.BlockSpec((None, C, 1), lambda b, t: (b, 0, 0)),
        ],
        out_specs=pl.BlockSpec((None, C, T), lambda b, t: (b, 0, t)),
        compiler_params=pltpu.CompilerParams(
            dimension_semantics=("parallel", "parallel")),
    )(x_flat, gate)

    return out_flat.reshape(B, C, H, W)


def reference(x, w1, w2):
    y = jnp.mean(x, axis=(2, 3))                  # adaptive avg pool to 1x1
    y = jnp.maximum(y @ w1.T, 0.0)                # fc1 + relu (no bias)
    y = jax.nn.sigmoid(y @ w2.T)                  # fc2 + sigmoid (no bias)
    return x * y[:, :, None, None]


if __name__ == "__main__":
    B, C, H, W = 2, 32, 32, 32          # HW = 1024 -> two 512-lane tiles
    reduction_ratio = 16
    C_red = C // reduction_ratio        # 2

    key = jax.random.PRNGKey(0)
    kx, k1, k2 = jax.random.split(key, 3)
    x = jax.random.normal(kx, (B, C, H, W), dtype=jnp.float32)
    # Deterministic params (shapes per nn.Linear(C, C_red) / nn.Linear(C_red, C))
    w1 = jax.random.normal(k1, (C_red, C), dtype=jnp.float32) * 0.1
    w2 = jax.random.normal(k2, (C, C_red), dtype=jnp.float32) * 0.1

    out = jax.block_until_ready(channel_attention(x, w1, w2))
    ref = reference(x, w1, w2)
    assert out.shape == (B, C, H, W)
    assert jnp.allclose(out, ref, atol=1e-5, rtol=1e-5)

    print("KERNEL_OK")
</pallas_src>

<mosaic_0001>
module attributes {stable_mosaic.version = 11 : i64} {
  func.func @_pool_sum_kernel(%arg0: i32, %arg1: i32, %arg2: memref<1x32x512xf32, #tpu.memory_space<vmem>>, %arg3: memref<1x32x1xf32, #tpu.memory_space<vmem>>) attributes {dimension_semantics = [#tpu.dimension_semantics<parallel>, #tpu.dimension_semantics<arbitrary>], iteration_bounds = array<i64: 2, 2>, scalar_prefetch = 0 : i64, scratch_operands = 0 : i64, tpu.core_type = #tpu.core_type<tc>, window_params = [{transform_indices = @transform_0, window_bounds = array<i64: 1, 32, 512>}, {transform_indices = @transform_1, window_bounds = array<i64: 1, 32, 1>}]} {
    %c0_i32 = arith.constant 0 : i32
    %0 = arith.cmpi eq, %arg1, %c0_i32 : i32
    %1 = arith.extui %0 : i1 to i32
    %c0_i32_0 = arith.constant 0 : i32
    %2 = arith.cmpi ne, %1, %c0_i32_0 : i32
    scf.if %2 {
      %cst_9 = arith.constant 0.000000e+00 : f32
      %13 = vector.broadcast %cst_9 : f32 to vector<32x1xf32>
      %c0_10 = arith.constant 0 : index
      %c0_11 = arith.constant 0 : index
      %c0_12 = arith.constant 0 : index
      %14 = vector.load %arg3[%c0_10, %c0_11, %c0_12] : memref<1x32x1xf32, #tpu.memory_space<vmem>>, vector<1x32x1xf32>
      %15 = vector.shape_cast %14 : vector<1x32x1xf32> to vector<32x1xf32>
      %16 = vector.shape_cast %13 : vector<32x1xf32> to vector<1x32x1xf32>
      tpu.vector_store %arg3[%c0_10, %c0_11, %c0_12], %16 {strides = array<i32>} : memref<1x32x1xf32, #tpu.memory_space<vmem>>, vector<1x32x1xf32>,
    } else {
    }
    %c0 = arith.constant 0 : index
    %c0_1 = arith.constant 0 : index
    %c0_2 = arith.constant 0 : index
    %3 = vector.load %arg3[%c0, %c0_1, %c0_2] : memref<1x32x1xf32, #tpu.memory_space<vmem>>, vector<1x32x1xf32>
    %4 = vector.shape_cast %3 : vector<1x32x1xf32> to vector<32x1xf32>
    %c0_3 = arith.constant 0 : index
    %c0_4 = arith.constant 0 : index
    %c0_5 = arith.constant 0 : index
    %5 = vector.load %arg2[%c0_3, %c0_4, %c0_5] : memref<1x32x512xf32, #tpu.memory_space<vmem>>, vector<1x32x512xf32>
    %6 = vector.shape_cast %5 : vector<1x32x512xf32> to vector<32x512xf32>
    %cst = arith.constant dense<0.000000e+00> : vector<32xf32>
    %7 = vector.multi_reduction <add>, %6, %cst [1] : vector<32x512xf32> to vector<32xf32>
    %8 = vector.shape_cast %7 : vector<32xf32> to vector<32x1xf32>
    %9 = arith.addf %4, %8 : vector<32x1xf32>
    %c0_6 = arith.constant 0 : index
    %c0_7 = arith.constant 0 : index
    %c0_8 = arith.constant 0 : index
    %10 = vector.load %arg3[%c0_6, %c0_7, %c0_8] : memref<1x32x1xf32, #tpu.memory_space<vmem>>, vector<1x32x1xf32>
    %11 = vector.shape_cast %10 : vector<1x32x1xf32> to vector<32x1xf32>
    %12 = vector.shape_cast %9 : vector<32x1xf32> to vector<1x32x1xf32>
    tpu.vector_store %arg3[%c0_6, %c0_7, %c0_8], %12 {strides = array<i32>} : memref<1x32x1xf32, #tpu.memory_space<vmem>>, vector<1x32x1xf32>,
    return
  }
  func.func @transform_0(%arg0: i32, %arg1: i32) -> (i32, i32, i32) {
    %c0_i32 = arith.constant 0 : i32
    %c0_i32_0 = arith.constant 0 : i32
    return %arg0, %c0_i32, %arg1 : i32, i32, i32
  }
  func.func @transform_1(%arg0: i32, %arg1: i32) -> (i32, i32, i32) {
    %c0_i32 = arith.constant 0 : i32
    %c0_i32_0 = arith.constant 0 : i32
    %c0_i32_1 = arith.constant 0 : i32
    return %arg0, %c0_i32, %c0_i32_0 : i32, i32, i32
  }
}

</mosaic_0001>

<bundles_post_ra>
// kernel: tpu_custom_call.1
= control target key start
LH: loop header
LB: loop body
LE: loop exit
PB: predicated region body
PF: predicated region fallthrough
CT: control target
= control target key end

     0   :  { %6 = vsyncpa [#allocation3], 0  ;;  %s679_s0 = inlined_call_operand.hbm [shape: f32[2,32,1024], index: 0, kind: input, shape index: {}]   ;;  %s680_s1 = inlined_call_operand.vmem [shape: f32[2,32,1], index: 1, kind: output, shape index: {}]  }
   0x1   :  { %8 = vsyncpa [#allocation3 + $0x1], 0  ;;  %s497_s6 = smov 0   ;;  %s499_s7 = smov 0  }
   0x2   :  { %s501_s8 = smov 0   ;;  %s503_s9 = smov 0  }
   0x3   :  { %s505_s10 = smov 0   ;;  %s507_s11 = smov 0  }
   0x4   :  { %s509_s12 = smov 0   ;;  %s511_s13 = smov 0  }
   0x5 LB: > { %s293_s14 = sadd.s32 4294967295, %s480_s13   ;;  %s23_s15 = sadd.s32 1, %s472_s11  ;;  %s480_s13 = sphi %s511_s13, %s14_s13   ;;  %s476_s12 = sphi %s509_s12, %s690_s12   ;;  %s472_s11 = sphi %s507_s11, %s689_s11   ;;  %s468_s10 = sphi %s505_s10, %s688_s10   ;;  %s464_s9 = sphi %s503_s9, %s687_s9   ;;  %s460_s8 = sphi %s501_s8, %s686_s8   ;;  %s456_s7 = sphi %s499_s7, %s685_s7   ;;  %s452_s6 = sphi %s497_s6, %s684_s6  }
   0x6   : > { %p24_p0 = scmp.ge.s32.totalorder %s23_s15, 2  ;;  %s26_s16 = sadd.s32 1, %s476_s12 }
   0x7   : > { %s35_s17 = sadd.s32 1, %s460_s8  ;;  %p42_p1 = scmp.ne.s32.totalorder %s460_s8, %s456_s7 }
   0x8   : > { %s692_s15 = smov (%p24_p0, %s23_s15), 0  ;;  %s694_s16 = smov (!%p24_p0, %s26_s16), %s476_s12 }
   0x9   : > { %s31_s18 = ssub.s32 %s472_s11, %s692_s15  ;;  %p43_p2 = scmp.eq.s32.totalorder %s480_s13, 0 }
   0xa   : > { %p28_p3 = scmp.ge.s32.totalorder %s694_s16, 2  ;;  %p48_p4 = scmp.ne.s32.totalorder %s456_s7, %s452_s6 }
   0xb   : > { %p548_p5 = por %p43_p2, %p42_p1  ;;  %p49_p6 = scmp.eq.s32.totalorder %s293_s14, 0 }
   0xc   : > { %s696_s16 = smov (%p28_p3, %s694_s16), 0  ;;  %p315_p8 = scmp.lt.s32.totalorder %s480_s13, 4 }
   0xd   : > { %p554_p7 = por %p49_p6, %p48_p4  ;;  %s30_s21 = ssub.s32 %s476_s12, %s696_s16 }
   0xe   : > { %s32_s22 = sor.u32 %s31_s18, %s30_s21  ;;  %s98_s23 = sand.u32 1, %s460_s8  }
   0xf   : > { %p33_p9 = scmp.eq.s32.totalorder %s32_s22, 0  ;;  %s297_s24 = sshll.u32 %s98_s23, 7 }
  0x10   : > { %s298_s25 = sshll.u32 %s472_s11, 2  ;;  %s299_s27 = sshll.u32 %s476_s12, 5 }
  0x11   : > { %s564_s26 = scalar_select %p33_p9, %s460_s8, %s35_s17  }
  0x12   : > { %s108_s28 = sadd.s32 %s299_s27, %s298_s25  ;;  %s102_s29 = scalar_lea.vmem [#allocation2], %s297_s24 }
  0x13   : > { %s111_s30 = sshll.u32 %s102_s29, 4  ;;  %s300_s2 = sshll.u32 %s108_s28, 7  ;;  %s567_s30 = int_to_ptr.vmem [resolvable:$true] %s111_s30 }
  0x14   : > { %s572_s5 = scalar_lea.hbm %s679_s0, %s300_s2  ;;  %p578_p10 = pnand %p315_p8, %p548_p5 }
  0x15   : > { %s582_s14 = scalar_lea.sflag [#allocation3], %s98_s23  ;;  %s384_s17 = scalar_lea.hbm %s572_s5, 2048 }
  0x16   : > { %p385_p11 = scmp.ne.s32.totalorder %s572_s5, %s384_s17  ;;  %p386_p12 = pneg %p578_p10 }
  0x17   : > { %s389_s21 = scalar_lea.hbm %s679_s0, 8192  ;;  %p390_p1 = scmp.lt.u32.totalorder %s572_s5, %s679_s0 }
  0x18   : > { %p387_p13 = pnand %p386_p12, %p385_p11  ;;  %p391_p2 = scmp.lt.u32.totalorder %s389_s21, %s384_s17 }
  0x19   : > { %p393_p4 = scmp.lt.u32.totalorder %s384_s17, %s572_s5 }
  0x1a   : > { %p388_p0 = pneg %p387_p13  ;;  %p392_p3 = por %p391_p2, %p390_p1 }
  0x1c   : > { %p394_p5 = por %p393_p4, %p392_p3 }
  0x1e   : > { %p395_p6 = pnand %p394_p5, %p388_p0 }
  0x20   : > { %398 = shalt.err (!%p395_p6)
}
  0x21   : > { %s399_s23 = scalar_lea.vmem %s567_s30, 2048  ;;  %s482_s25 = smov [#allocation2]  }
  0x22   : > { %p400_p8 = scmp.ne.s32.totalorder %s567_s30, %s399_s23  ;;  %s404_s27 = sshll.u32 %s482_s25, 4  ;;  %s405_s27 = int_to_ptr.vmem [resolvable:$false] %s404_s27 }
  0x23   : > { %s406_s28 = scalar_lea.vmem %s405_s27, 4096  ;;  %p407_p13 = scmp.lt.s32.totalorder %s567_s30, %s405_s27 }
  0x24   : > { %p402_p9 = pnand %p400_p8, %p386_p12  ;;  %p408_p1 = scmp.lt.s32.totalorder %s406_s28, %s399_s23 }
  0x26   : > { %p403_p11 = pneg %p402_p9  ;;  %p409_p2 = por %p408_p1, %p407_p13 }
  0x28   : > { %p410_p3 = pnand %p409_p2, %p403_p11 }
  0x2a   : > { %413 = shalt.err (!%p410_p3)
}
  0x2b   : > { %s483_s29 = smov 1024   ;;  %s484_s2 = smov 512  }
  0x2c   : > { %s485_s3 = smov 32   ;;  %p301_p12 = scmp.ge.s32.totalorder %s480_s13, 1 }
  0x2d   : > { %314 = dma.hbm_to_vmem [thread:$0]  (!%p578_p10), %s572_s5, 2048, %s567_s30, %s582_s14, %s483_s29, %s484_s2, %s485_s3  }
  0x2e   : > { %p119_p0 = scmp.lt.s32.totalorder %s480_s13, 5 }
  0x30   : > { %p120_p4 = pnand %p301_p12, %p119_p0 }
  0x31   : > { %s125_s4 = sand.u32 (!%p120_p4), 1, %s456_s7  }
  0x32   : > { %123 = sbr.rel (%p120_p4) target bundleno = 224 (0xe0), region = 24  ;;  %s302_s17 = sshll.u32 (!%p120_p4), %s125_s4, 7 }
  0x33   : > { %s126_s18 = scalar_lea.sflag (!%p120_p4), [#allocation3], %s125_s4  ;;  %s613_s19 = scalar_lea.vmem (!%p120_p4), [#allocation2], %s302_s17 }
  0x39   : > { %447 = dma.done.wait (%p554_p7), %s126_s18, 2048  }
  0x3a   : > { %449 = vsyncadd (%p554_p7), %s126_s18, 4294965248  ;;  %p149_p5 = scmp.lt.s32.totalorder %s468_s10, 1  ;;  %p305_p10 = scmp.ne.s32.totalorder %s464_s9, 0 }
  0x3b   : > { %vm158_vm0 = vcmask (!%p305_p10), 7168   ;;  %v486_v0 = vmov (!%p305_p10), 0.0  }
  0x3c   : > { %s698_s10 = smov (!%p149_p5, %s468_s10), 1  ;;  %157 = sbr.rel (%p305_p10) target bundleno = 67 (0x43), region = 32 }
  0x3d   : > { %s308_s30 = sshll.u32 %s698_s10, 5 }
  0x3e   : > { %s624_s14 = scalar_lea.vmem %s680_s1, %s308_s30 }
  0x3f   : > { %159 = vst.msk [vmem:[%s624_s14] sm:$0xff] (!%p305_p10), %vm158_vm0, %v486_v0  ;;  %160 = vst.msk [vmem:[%s624_s14 + $0x8] sm:$0xff] (!%p305_p10), %vm158_vm0, %v486_v0 }
  0x40   : > { %161 = vst.msk [vmem:[%s624_s14 + $0x10] sm:$0xff] (!%p305_p10), %vm158_vm0, %v486_v0  ;;  %162 = vst.msk [vmem:[%s624_s14 + $0x18] sm:$0xff] (!%p305_p10), %vm158_vm0, %v486_v0 }
  0x43 PF: > { %v175_v1 = vld [vmem:[%s613_s19 + $0x40] sm:$0xff]  ;;  %v176_v2 = vld [vmem:[%s613_s19 + $0x48] sm:$0xff]  ;;  %v177_v3 = vld [vmem:[%s613_s19 + $0x50] sm:$0xff]  ;;  %vm207_vm1 = vcmask 7168  }
  0x44   : > { %v193_v4 = vadd.f32 %v176_v2, %v175_v1  ;;  %v167_v5 = vld [vmem:[%s613_s19] sm:$0xff]  ;;  %v168_v6 = vld [vmem:[%s613_s19 + $0x8] sm:$0xff]  ;;  %v178_v7 = vld [vmem:[%s613_s19 + $0x58] sm:$0xff] }
  0x45   : > { %v169_v8 = vld [vmem:[%s613_s19 + $0x10] sm:$0xff]  ;;  %v183_v9 = vadd.f32 %v168_v6, %v167_v5  ;;  %v179_v10 = vld [vmem:[%s613_s19 + $0x60] sm:$0xff]  ;;  %v170_v12 = vld [vmem:[%s613_s19 + $0x18] sm:$0xff] }
  0x46   : > { %v194_v11 = vadd.f32 %v193_v4, %v177_v3  ;;  %v180_v13 = vld [vmem:[%s613_s19 + $0x68] sm:$0xff]  ;;  %v181_v14 = vld [vmem:[%s613_s19 + $0x70] sm:$0xff]  ;;  %v171_v17 = vld [vmem:[%s613_s19 + $0x20] sm:$0xff] }
  0x47   : > { %v184_v15 = vadd.f32 %v183_v9, %v169_v8  ;;  %v198_v16 = vadd.f32 %v180_v13, %v179_v10  ;;  %v172_v18 = vld [vmem:[%s613_s19 + $0x28] sm:$0xff]  ;;  %v173_v19 = vld [vmem:[%s613_s19 + $0x30] sm:$0xff]  ;;  %v182_v21 = vld [vmem:[%s613_s19 + $0x78] sm:$0xff] }
  0x48   : > { %v195_v20 = vadd.f32 %v194_v11, %v178_v7  ;;  %v188_v22 = vadd.f32 %v172_v18, %v171_v17  ;;  %v174_v25 = vld [vmem:[%s613_s19 + $0x38] sm:$0xff]  ;;  %v165_v29 = vld [vmem:[%s624_s14 + $0x10] sm:$0xff]  ;;  %v163_v30 = vld [vmem:[%s624_s14] sm:$0xff] }
  0x49   : > { %v185_v23 = vadd.f32 %v184_v15, %v170_v12  ;;  %v199_v24 = vadd.f32 %v198_v16, %v181_v14  ;;  %v166_v35 = vld [vmem:[%s624_s14 + $0x18] sm:$0xff]  ;;  %v164_v36 = vld [vmem:[%s624_s14 + $0x8] sm:$0xff] }
  0x4a   : > { %196 = vadd.xlane.f32.xlu1 %v195_v20  ;;  %v189_v26 = vadd.f32 %v188_v22, %v173_v19 }
  0x4b   : > { %186 = vadd.xlane.f32.xlu0 %v185_v23  ;;  %v200_v27 = vadd.f32 %v199_v24, %v182_v21 }
  0x4c   : > { %v190_v28 = vadd.f32 %v189_v26, %v174_v25 }
  0x4e   : > { %201 = vadd.xlane.f32.xlu1 %v200_v27 }
  0x4f   : > { %191 = vadd.xlane.f32.xlu0 %v190_v28 }
  0xd7   : > { %v197_v31 = vpop.xlane.xlu1 %196 }
  0xd8   : > { %v205_v32 = vadd.f32 %v197_v31, %v165_v29  ;;  %v187_v33 = vpop.xlane.xlu0 %186 }
  0xd9   : > { %v203_v34 = vadd.f32 %v187_v33, %v163_v30 }
  0xda   : > { %210 = vst.msk [vmem:[%s624_s14 + $0x10] sm:$0xff] %vm207_vm1, %v205_v32 }
  0xdb   : > { %208 = vst.msk [vmem:[%s624_s14] sm:$0xff] %vm207_vm1, %v203_v34  ;;  %v202_v37 = vpop.xlane.xlu1 %201 }
  0xdc   : > { %v206_v38 = vadd.f32 %v202_v37, %v166_v35  ;;  %v192_v39 = vpop.xlane.xlu0 %191 }
  0xdd   : > { %v204_v40 = vadd.f32 %v192_v39, %v164_v36 }
  0xde   : > { %211 = vst.msk [vmem:[%s624_s14 + $0x18] sm:$0xff] %vm207_vm1, %v206_v38 }
  0xdf   : > { %209 = vst.msk [vmem:[%s624_s14 + $0x8] sm:$0xff] %vm207_vm1, %v204_v40 }
  0xe0 PF: > { %s14_s13 = sadd.s32 1, %s480_s13   ;;  %s684_s6 = smov %s456_s7 }
  0xe1   : > { %p11_p7 = scmp.ge.s32.totalorder %s14_s13, 6   ;;  %s685_s7 = smov %s460_s8 }
  0xe2   : > { %s686_s8 = smov %s564_s26  ;;  %s687_s9 = smov %s472_s11 }
  0xe3   : > { %s688_s10 = smov %s476_s12  ;;  %s689_s11 = smov %s692_s15 }
  0xe4   : > { %s690_s12 = smov %s696_s16  ;;  %13 = sbr.rel (!%p11_p7) target bundleno = 5 (0x5), region = 68 }
  0xeb   :  { %233 = vsyncpa [#allocation3], 1 }
  0xec   :  { %235 = vsyncpa [#allocation3 + $0x1], 1 }

</bundles_post_ra>
